<compile_context>
chip_gen: v7x
topology: tpu7x:2x2x1
jax: 0.10.0
libtpu: 0.0.40
codegen_flags: <defaults>
</compile_context>

<pallas_src>
import functools

import jax
import jax.numpy as jnp
from jax.experimental import pallas as pl
from jax.experimental.pallas import tpu as pltpu

BN_EPS = 1e-5
LANE = 128
_VMEM_LIMIT = 48 * 1024 * 1024


def _round_up(x, m):
    return ((x + m - 1) // m) * m


def _pick_tile(m, requested):
    """Tile size over the M (rows) axis and the padded M."""
    t = min(requested, _round_up(m, 16))
    t = _round_up(t, 16)                      # bf16 sublane friendly
    return t, _round_up(m, t)


# --------------------------- Pallas kernels ----------------------------------
def _conv_stats_kernel(*refs, n_mm):
    """Pass 1: y_j = taps_j @ w_j (bf16 in, f32 acc) + per-tile BN partial stats.

    refs = taps_0, w_0, [taps_1, w_1,] y_0, [y_1,] stats
    stats block: (1, 2*n_mm, Cout_pad) = per-channel [sum, sumsq] per matmul.
    """
    y_refs = refs[2 * n_mm: 3 * n_mm]
    stats_ref = refs[3 * n_mm]
    parts = []
    for j in range(n_mm):
        acc = jnp.dot(refs[2 * j][...], refs[2 * j + 1][...],
                      preferred_element_type=jnp.float32)
        y_refs[j][...] = acc
        parts.append(jnp.sum(acc, axis=0, keepdims=True))
        parts.append(jnp.sum(acc * acc, axis=0, keepdims=True))
    stats_ref[...] = jnp.concatenate(parts, axis=0)[None]


def _bn_add_relu_kernel(*refs, n_bn, has_res, relu):
    """Pass 2: sum_j(y_j*scale_j + shift_j) [+ residual] [+ ReLU] -> out."""
    k = 0
    acc = None
    for _ in range(n_bn):
        y = refs[k][...]
        scale = refs[k + 1][...]
        shift = refs[k + 2][...]
        k += 3
        v = y * scale + shift
        acc = v if acc is None else acc + v
    if has_res:
        acc = acc + refs[k][...]
        k += 1
    if relu:
        acc = jnp.maximum(acc, 0.0)
    refs[k][...] = acc.astype(refs[k].dtype)


# ----------------------------- pallas wrappers --------------------------------
def _conv_partial_stats(taps_ws, tile_m, m_pad, cout_p):
    """taps_ws: list of (taps (m_pad, K_j) bf16, w (K_j, cout_p) bf16)."""
    n_mm = len(taps_ws)
    num_tiles = m_pad // tile_m
    in_arrays, in_specs = [], []
    for taps, w in taps_ws:
        k = taps.shape[1]
        in_arrays += [taps, w]
        in_specs += [pl.BlockSpec((tile_m, k), lambda i: (i, 0)),
                     pl.BlockSpec((k, cout_p), lambda i: (0, 0))]
    out_shape = tuple(
        [jax.ShapeDtypeStruct((m_pad, cout_p), jnp.float32)] * n_mm
        + [jax.ShapeDtypeStruct((num_tiles, 2 * n_mm, cout_p), jnp.float32)])
    out_specs = tuple(
        [pl.BlockSpec((tile_m, cout_p), lambda i: (i, 0))] * n_mm
        + [pl.BlockSpec((1, 2 * n_mm, cout_p), lambda i: (i, 0, 0))])
    outs = pl.pallas_call(
        functools.partial(_conv_stats_kernel, n_mm=n_mm),
        out_shape=out_shape,
        grid=(num_tiles,),
        in_specs=in_specs,
        out_specs=out_specs,
        compiler_params=pltpu.CompilerParams(
            dimension_semantics=("parallel",),
            vmem_limit_bytes=_VMEM_LIMIT),
    )(*in_arrays)
    return list(outs[:n_mm]), outs[n_mm]


def _bn_add_relu(bn_triples, residual, relu, tile_m, m_pad, cout_p, out_dtype):
    """bn_triples: list of (y (m_pad,cout_p) f32, scale (1,cout_p), shift (1,cout_p))."""
    n_bn = len(bn_triples)
    num_tiles = m_pad // tile_m
    in_arrays, in_specs = [], []
    for y, scale, shift in bn_triples:
        in_arrays += [y, scale, shift]
        in_specs += [pl.BlockSpec((tile_m, cout_p), lambda i: (i, 0)),
                     pl.BlockSpec((1, cout_p), lambda i: (0, 0)),
                     pl.BlockSpec((1, cout_p), lambda i: (0, 0))]
    if residual is not None:
        in_arrays.append(residual)
        in_specs.append(pl.BlockSpec((tile_m, cout_p), lambda i: (i, 0)))
    return pl.pallas_call(
        functools.partial(_bn_add_relu_kernel, n_bn=n_bn,
                          has_res=residual is not None, relu=relu),
        out_shape=jax.ShapeDtypeStruct((m_pad, cout_p), out_dtype),
        grid=(num_tiles,),
        in_specs=in_specs,
        out_specs=pl.BlockSpec((tile_m, cout_p), lambda i: (i, 0)),
        compiler_params=pltpu.CompilerParams(
            dimension_semantics=("parallel",),
            vmem_limit_bytes=_VMEM_LIMIT),
    )(*in_arrays)


# ------------------------------- JAX glue -------------------------------------
def _im2col_3x3(x_nhwc, stride):
    """Pad=1, 3x3 taps flattened into the contraction dim: (M, 9*C)."""
    n, h, w, c = x_nhwc.shape
    ho = (h - 1) // stride + 1
    wo = (w - 1) // stride + 1
    xp = jnp.pad(x_nhwc, ((0, 0), (1, 1), (1, 1), (0, 0)))
    cols = []
    for ky in range(3):
        for kx in range(3):
            sl = xp[:, ky: ky + (ho - 1) * stride + 1: stride,
                       kx: kx + (wo - 1) * stride + 1: stride, :]
            cols.append(sl.reshape(n * ho * wo, c))
    return jnp.concatenate(cols, axis=1), ho, wo


def _fold_bn(stat_sums, j, count, gamma, beta, cout_p, eps=BN_EPS):
    """Fold training-mode BN into y*scale + shift (one-pass sums, biased var)."""
    cout = gamma.shape[0]
    gp = jnp.pad(gamma.astype(jnp.float32), (0, cout_p - cout))
    bp = jnp.pad(beta.astype(jnp.float32), (0, cout_p - cout))
    mean = stat_sums[2 * j] / count
    var = jnp.maximum(stat_sums[2 * j + 1] / count - mean * mean, 0.0)
    scale = gp * jax.lax.rsqrt(var + eps)
    shift = bp - mean * scale
    return scale.reshape(1, cout_p), shift.reshape(1, cout_p)


def basic_block_forward(x_nchw, params, stride, tile_m=512):
    """BasicBlock forward. Input/output NCHW (PyTorch convention)."""
    x = jnp.transpose(x_nchw, (0, 2, 3, 1)).astype(jnp.float32)   # -> NHWC
    n, h, w, cin = x.shape
    cout = params["w1"].shape[-1]
    cout_p = _round_up(cout, LANE)
    has_ds = (stride != 1) or (cin != cout)

    # ---- stage A: conv1 (3x3, stride) + bn1 + relu ---------------------------
    taps1, h1, w1o = _im2col_3x3(x, stride)                 # (M, 9*cin)
    m = taps1.shape[0]
    tm, m_pad = _pick_tile(m, tile_m)

    taps1 = jnp.pad(taps1, ((0, m_pad - m), (0, 0))).astype(jnp.bfloat16)
    w1 = jnp.pad(params["w1"].reshape(9 * cin, cout),
                 ((0, 0), (0, cout_p - cout))).astype(jnp.bfloat16)

    (y1,), stats1 = _conv_partial_stats([(taps1, w1)], tm, m_pad, cout_p)
    sums1 = jnp.sum(stats1, axis=0)
    sc1, sh1 = _fold_bn(sums1, 0, m, params["g1"], params["b1"], cout_p)
    # stage-A activations written in bf16: halves HBM traffic, feeds conv2 MXU directly
    r = _bn_add_relu([(y1, sc1, sh1)], None, True, tm, m_pad, cout_p, jnp.bfloat16)
    r_img = r[:m, :cout].reshape(n, h1, w1o, cout)

    # ---- stage B: conv2 (3x3) + bn2 [+ 1x1 downsample + bn_d] + add + relu ---
    taps2, _, _ = _im2col_3x3(r_img, 1)                     # (M, 9*cout) bf16
    taps2 = jnp.pad(taps2, ((0, m_pad - m), (0, 0)))
    w2 = jnp.pad(params["w2"].reshape(9 * cout, cout),
                 ((0, 0), (0, cout_p - cout))).astype(jnp.bfloat16)

    if has_ds:
        xs = x[:, ::stride, ::stride, :].reshape(m, cin)    # 1x1 stride conv = subsample
        xs = jnp.pad(xs, ((0, m_pad - m), (0, 0))).astype(jnp.bfloat16)
        wd = jnp.pad(params["wd"].reshape(cin, cout),
                     ((0, 0), (0, cout_p - cout))).astype(jnp.bfloat16)
        (y2, yd), stats2 = _conv_partial_stats(
            [(taps2, w2), (xs, wd)], tm, m_pad, cout_p)
        sums2 = jnp.sum(stats2, axis=0)
        sc2, sh2 = _fold_bn(sums2, 0, m, params["g2"], params["b2"], cout_p)
        scd, shd = _fold_bn(sums2, 1, m, params["gd"], params["bd"], cout_p)
        out = _bn_add_relu([(y2, sc2, sh2), (yd, scd, shd)], None, True,
                           tm, m_pad, cout_p, jnp.float32)
    else:
        (y2,), stats2 = _conv_partial_stats([(taps2, w2)], tm, m_pad, cout_p)
        sums2 = jnp.sum(stats2, axis=0)
        sc2, sh2 = _fold_bn(sums2, 0, m, params["g2"], params["b2"], cout_p)
        res = jnp.pad(x.reshape(m, cin), ((0, m_pad - m), (0, cout_p - cin)))
        out = _bn_add_relu([(y2, sc2, sh2)], res, True,
                           tm, m_pad, cout_p, jnp.float32)

    out = out[:m, :cout].reshape(n, h1, w1o, cout)
    return jnp.transpose(out, (0, 3, 1, 2))                 # -> NCHW


# ---------------------------- pure-JAX reference ------------------------------
def _ref_conv(x_nhwc, w_hwio, stride, pad):
    # bf16 inputs + f32 accumulation to mirror the kernel's MXU numerics.
    return jax.lax.conv_general_dilated(
        x_nhwc.astype(jnp.bfloat16), w_hwio.astype(jnp.bfloat16),
        window_strides=(stride, stride),
        padding=[(pad, pad), (pad, pad)],
        dimension_numbers=("NHWC", "HWIO", "NHWC"),
        preferred_element_type=jnp.float32)


def _ref_bn(x, gamma, beta, eps=BN_EPS):
    mean = jnp.mean(x, axis=(0, 1, 2), keepdims=True)
    var = jnp.mean((x - mean) ** 2, axis=(0, 1, 2), keepdims=True)
    return (x - mean) * jax.lax.rsqrt(var + eps) * gamma + beta


def basic_block_reference(x_nchw, params, stride):
    x = jnp.transpose(x_nchw, (0, 2, 3, 1)).astype(jnp.float32)
    cin = x.shape[-1]
    cout = params["w1"].shape[-1]
    r = jnp.maximum(_ref_bn(_ref_conv(x, params["w1"], stride, 1),
                            params["g1"], params["b1"]), 0.0)
    r = _ref_bn(_ref_conv(r, params["w2"], 1, 1), params["g2"], params["b2"])
    if stride != 1 or cin != cout:
        s = _ref_bn(_ref_conv(x, params["wd"], stride, 0), params["gd"], params["bd"])
    else:
        s = x
    return jnp.transpose(jnp.maximum(s + r, 0.0), (0, 3, 1, 2))


# --------------------------------- main ----------------------------------------
def _make_params(key, cin, cout, with_ds):
    ks = jax.random.split(key, 9)
    p = {
        "w1": 0.1 * jax.random.normal(ks[0], (3, 3, cin, cout), jnp.float32),
        "w2": 0.1 * jax.random.normal(ks[1], (3, 3, cout, cout), jnp.float32),
        "g1": 1.0 + 0.1 * jax.random.normal(ks[2], (cout,), jnp.float32),
        "b1": 0.1 * jax.random.normal(ks[3], (cout,), jnp.float32),
        "g2": 1.0 + 0.1 * jax.random.normal(ks[4], (cout,), jnp.float32),
        "b2": 0.1 * jax.random.normal(ks[5], (cout,), jnp.float32),
    }
    if with_ds:
        p["wd"] = 0.1 * jax.random.normal(ks[6], (1, 1, cin, cout), jnp.float32)
        p["gd"] = 1.0 + 0.1 * jax.random.normal(ks[7], (cout,), jnp.float32)
        p["bd"] = 0.1 * jax.random.normal(ks[8], (cout,), jnp.float32)
    return p


if __name__ == "__main__":
    key = jax.random.PRNGKey(0)
    configs = [
        # (cin, cout, stride, N, H, W) : downsample branch, 2 M-tiles of 64 rows
        (4, 8, 2, 2, 16, 16),
        # identity-shortcut branch, 8 M-tiles of 64 rows (exercises tiled BN stats)
        (8, 8, 1, 2, 16, 16),
    ]
    for idx, (cin, cout, stride, n, h, w) in enumerate(configs):
        kx, kp, key = jax.random.split(key, 3)
        x = jax.random.normal(kx, (n, cin, h, w), jnp.float32)   # NCHW like PyTorch
        params = _make_params(kp, cin, cout, with_ds=(stride != 1 or cin != cout))

        fwd = jax.jit(functools.partial(basic_block_forward, stride=stride, tile_m=64))
        out = jax.block_until_ready(fwd(x, params))
        ref = jax.block_until_ready(basic_block_reference(x, params, stride))

        h1 = (h - 1) // stride + 1
        assert out.shape == (n, cout, h1, h1), out.shape
        err = float(jnp.max(jnp.abs(out - ref)))
        assert jnp.allclose(out, ref, atol=5e-3, rtol=5e-3), \
            f"config {idx}: max abs diff = {err}"
    print("KERNEL_OK")
</pallas_src>

<mosaic_0001>
module attributes {stable_mosaic.version = 11 : i64} {
  func.func @_bn_add_relu_kernel(%arg0: i32, %arg1: memref<64x128xf32, #tpu.memory_space<vmem>>, %arg2: memref<1x128xf32, #tpu.memory_space<vmem>>, %arg3: memref<1x128xf32, #tpu.memory_space<vmem>>, %arg4: memref<64x128xbf16, #tpu.memory_space<vmem>>) attributes {dimension_semantics = [#tpu.dimension_semantics<parallel>], iteration_bounds = array<i64: 2>, scalar_prefetch = 0 : i64, scratch_operands = 0 : i64, tpu.core_type = #tpu.core_type<tc>, window_params = [{transform_indices = @transform_0, window_bounds = array<i64: 64, 128>}, {pipeline_mode = #tpu.pipeline_mode<synchronous>, transform_indices = @transform_1, window_bounds = array<i64: 1, 128>}, {pipeline_mode = #tpu.pipeline_mode<synchronous>, transform_indices = @transform_2, window_bounds = array<i64: 1, 128>}, {transform_indices = @transform_3, window_bounds = array<i64: 64, 128>}]} {
    %c0 = arith.constant 0 : index
    %c0_0 = arith.constant 0 : index
    %0 = vector.load %arg1[%c0, %c0_0] : memref<64x128xf32, #tpu.memory_space<vmem>>, vector<64x128xf32>
    %c0_1 = arith.constant 0 : index
    %c0_2 = arith.constant 0 : index
    %1 = vector.load %arg2[%c0_1, %c0_2] : memref<1x128xf32, #tpu.memory_space<vmem>>, vector<1x128xf32>
    %c0_3 = arith.constant 0 : index
    %c0_4 = arith.constant 0 : index
    %2 = vector.load %arg3[%c0_3, %c0_4] : memref<1x128xf32, #tpu.memory_space<vmem>>, vector<1x128xf32>
    %3 = vector.broadcast %1 : vector<1x128xf32> to vector<64x128xf32>
    %4 = arith.mulf %0, %3 : vector<64x128xf32>
    %5 = vector.broadcast %2 : vector<1x128xf32> to vector<64x128xf32>
    %6 = arith.addf %4, %5 : vector<64x128xf32>
    %cst = arith.constant 0.000000e+00 : f32
    %7 = vector.broadcast %cst : f32 to vector<64x128xf32>
    %8 = arith.maximumf %6, %7 : vector<64x128xf32>
    %9 = arith.truncf %8 : vector<64x128xf32> to vector<64x128xbf16>
    %c0_5 = arith.constant 0 : index
    %c0_6 = arith.constant 0 : index
    %10 = vector.load %arg4[%c0_5, %c0_6] : memref<64x128xbf16, #tpu.memory_space<vmem>>, vector<64x128xbf16>
    tpu.vector_store %arg4[%c0_5, %c0_6], %9 {strides = array<i32>} : memref<64x128xbf16, #tpu.memory_space<vmem>>, vector<64x128xbf16>,
    return
  }
  func.func @transform_0(%arg0: i32) -> (i32, i32) {
    %c0_i32 = arith.constant 0 : i32
    %c0_i32_0 = arith.constant 0 : i32
    return %arg0, %c0_i32 : i32, i32
  }
  func.func @transform_1(%arg0: i32) -> (i32, i32) {
    %c0_i32 = arith.constant 0 : i32
    %c0_i32_0 = arith.constant 0 : i32
    %c0_i32_1 = arith.constant 0 : i32
    return %c0_i32, %c0_i32_0 : i32, i32
  }
  func.func @transform_2(%arg0: i32) -> (i32, i32) {
    %c0_i32 = arith.constant 0 : i32
    %c0_i32_0 = arith.constant 0 : i32
    %c0_i32_1 = arith.constant 0 : i32
    return %c0_i32, %c0_i32_0 : i32, i32
  }
  func.func @transform_3(%arg0: i32) -> (i32, i32) {
    %c0_i32 = arith.constant 0 : i32
    %c0_i32_0 = arith.constant 0 : i32
    return %arg0, %c0_i32 : i32, i32
  }
}

module attributes {stable_mosaic.version = 11 : i64} {
  func.func @_conv_stats_kernel(%arg0: i32, %arg1: memref<64x36xbf16, #tpu.memory_space<vmem>>, %arg2: memref<36x128xbf16, #tpu.memory_space<vmem>>, %arg3: memref<64x128xf32, #tpu.memory_space<vmem>>, %arg4: memref<1x2x128xf32, #tpu.memory_space<vmem>>) attributes {dimension_semantics = [#tpu.dimension_semantics<parallel>], iteration_bounds = array<i64: 2>, scalar_prefetch = 0 : i64, scratch_operands = 0 : i64, tpu.core_type = #tpu.core_type<tc>, window_params = [{transform_indices = @transform_0, window_bounds = array<i64: 64, 36>}, {pipeline_mode = #tpu.pipeline_mode<synchronous>, transform_indices = @transform_1, window_bounds = array<i64: 36, 128>}, {transform_indices = @transform_2, window_bounds = array<i64: 64, 128>}, {transform_indices = @transform_3, window_bounds = array<i64: 1, 2, 128>}]} {
    %c0 = arith.constant 0 : index
    %c0_0 = arith.constant 0 : index
    %0 = vector.load %arg1[%c0, %c0_0] : memref<64x36xbf16, #tpu.memory_space<vmem>>, vector<64x36xbf16>
    %c0_1 = arith.constant 0 : index
    %c0_2 = arith.constant 0 : index
    %1 = vector.load %arg2[%c0_1, %c0_2] : memref<36x128xbf16, #tpu.memory_space<vmem>>, vector<36x128xbf16>
    %cst = arith.constant dense<0.000000e+00> : vector<64x128xf32>
    %2 = tpu.matmul %0, %1, %cst {dimension_numbers = #tpu.dot_dimension_numbers<[1], [0], [0], [1], [0, 0, 1, 1], [], []>} : vector<64x36xbf16>, vector<36x128xbf16>, vector<64x128xf32> -> vector<64x128xf32>
    %c0_3 = arith.constant 0 : index
    %c0_4 = arith.constant 0 : index
    %3 = vector.load %arg3[%c0_3, %c0_4] : memref<64x128xf32, #tpu.memory_space<vmem>>, vector<64x128xf32>
    tpu.vector_store %arg3[%c0_3, %c0_4], %2 {strides = array<i32>} : memref<64x128xf32, #tpu.memory_space<vmem>>, vector<64x128xf32>,
    %cst_5 = arith.constant dense<0.000000e+00> : vector<128xf32>
    %4 = vector.multi_reduction <add>, %2, %cst_5 [0] : vector<64x128xf32> to vector<128xf32>
    %5 = vector.shape_cast %4 : vector<128xf32> to vector<1x128xf32>
    %6 = arith.mulf %2, %2 : vector<64x128xf32>
    %cst_6 = arith.constant dense<0.000000e+00> : vector<128xf32>
    %7 = vector.multi_reduction <add>, %6, %cst_6 [0] : vector<64x128xf32> to vector<128xf32>
    %8 = vector.shape_cast %7 : vector<128xf32> to vector<1x128xf32>
    %9 = tpu.concatenate %5, %8 in 0 : vector<1x128xf32>, vector<1x128xf32> -> vector<2x128xf32>
    %10 = vector.shape_cast %9 : vector<2x128xf32> to vector<1x2x128xf32>
    %c0_7 = arith.constant 0 : index
    %c0_8 = arith.constant 0 : index
    %c0_9 = arith.constant 0 : index
    %11 = vector.load %arg4[%c0_7, %c0_8, %c0_9] : memref<1x2x128xf32, #tpu.memory_space<vmem>>, vector<1x2x128xf32>
    tpu.vector_store %arg4[%c0_7, %c0_8, %c0_9], %10 {strides = array<i32>} : memref<1x2x128xf32, #tpu.memory_space<vmem>>, vector<1x2x128xf32>,
    return
  }
  func.func @transform_0(%arg0: i32) -> (i32, i32) {
    %c0_i32 = arith.constant 0 : i32
    %c0_i32_0 = arith.constant 0 : i32
    return %arg0, %c0_i32 : i32, i32
  }
  func.func @transform_1(%arg0: i32) -> (i32, i32) {
    %c0_i32 = arith.constant 0 : i32
    %c0_i32_0 = arith.constant 0 : i32
    %c0_i32_1 = arith.constant 0 : i32
    return %c0_i32, %c0_i32_0 : i32, i32
  }
  func.func @transform_2(%arg0: i32) -> (i32, i32) {
    %c0_i32 = arith.constant 0 : i32
    %c0_i32_0 = arith.constant 0 : i32
    return %arg0, %c0_i32 : i32, i32
  }
  func.func @transform_3(%arg0: i32) -> (i32, i32, i32) {
    %c0_i32 = arith.constant 0 : i32
    %c0_i32_0 = arith.constant 0 : i32
    %c0_i32_1 = arith.constant 0 : i32
    return %arg0, %c0_i32, %c0_i32_0 : i32, i32, i32
  }
}

module attributes {stable_mosaic.version = 11 : i64} {
  func.func @_conv_stats_kernel(%arg0: i32, %arg1: memref<64x72xbf16, #tpu.memory_space<vmem>>, %arg2: memref<72x128xbf16, #tpu.memory_space<vmem>>, %arg3: memref<64x4xbf16, #tpu.memory_space<vmem>>, %arg4: memref<4x128xbf16, #tpu.memory_space<vmem>>, %arg5: memref<64x128xf32, #tpu.memory_space<vmem>>, %arg6: memref<64x128xf32, #tpu.memory_space<vmem>>, %arg7: memref<1x4x128xf32, #tpu.memory_space<vmem>>) attributes {dimension_semantics = [#tpu.dimension_semantics<parallel>], iteration_bounds = array<i64: 2>, scalar_prefetch = 0 : i64, scratch_operands = 0 : i64, tpu.core_type = #tpu.core_type<tc>, window_params = [{transform_indices = @transform_0, window_bounds = array<i64: 64, 72>}, {pipeline_mode = #tpu.pipeline_mode<synchronous>, transform_indices = @transform_1, window_bounds = array<i64: 72, 128>}, {transform_indices = @transform_2, window_bounds = array<i64: 64, 4>}, {pipeline_mode = #tpu.pipeline_mode<synchronous>, transform_indices = @transform_3, window_bounds = array<i64: 4, 128>}, {transform_indices = @transform_4, window_bounds = array<i64: 64, 128>}, {transform_indices = @transform_5, window_bounds = array<i64: 64, 128>}, {transform_indices = @transform_6, window_bounds = array<i64: 1, 4, 128>}]} {
    %c0 = arith.constant 0 : index
    %c0_0 = arith.constant 0 : index
    %0 = vector.load %arg1[%c0, %c0_0] : memref<64x72xbf16, #tpu.memory_space<vmem>>, vector<64x72xbf16>
    %c0_1 = arith.constant 0 : index
    %c0_2 = arith.constant 0 : index
    %1 = vector.load %arg2[%c0_1, %c0_2] : memref<72x128xbf16, #tpu.memory_space<vmem>>, vector<72x128xbf16>
    %cst = arith.constant dense<0.000000e+00> : vector<64x128xf32>
    %2 = tpu.matmul %0, %1, %cst {dimension_numbers = #tpu.dot_dimension_numbers<[1], [0], [0], [1], [0, 0, 1, 1], [], []>} : vector<64x72xbf16>, vector<72x128xbf16>, vector<64x128xf32> -> vector<64x128xf32>
    %c0_3 = arith.constant 0 : index
    %c0_4 = arith.constant 0 : index
    %3 = vector.load %arg5[%c0_3, %c0_4] : memref<64x128xf32, #tpu.memory_space<vmem>>, vector<64x128xf32>
    tpu.vector_store %arg5[%c0_3, %c0_4], %2 {strides = array<i32>} : memref<64x128xf32, #tpu.memory_space<vmem>>, vector<64x128xf32>,
    %cst_5 = arith.constant dense<0.000000e+00> : vector<128xf32>
    %4 = vector.multi_reduction <add>, %2, %cst_5 [0] : vector<64x128xf32> to vector<128xf32>
    %5 = vector.shape_cast %4 : vector<128xf32> to vector<1x128xf32>
    %6 = arith.mulf %2, %2 : vector<64x128xf32>
    %cst_6 = arith.constant dense<0.000000e+00> : vector<128xf32>
    %7 = vector.multi_reduction <add>, %6, %cst_6 [0] : vector<64x128xf32> to vector<128xf32>
    %8 = vector.shape_cast %7 : vector<128xf32> to vector<1x128xf32>
    %c0_7 = arith.constant 0 : index
    %c0_8 = arith.constant 0 : index
    %9 = vector.load %arg3[%c0_7, %c0_8] : memref<64x4xbf16, #tpu.memory_space<vmem>>, vector<64x4xbf16>
    %c0_9 = arith.constant 0 : index
    %c0_10 = arith.constant 0 : index
    %10 = vector.load %arg4[%c0_9, %c0_10] : memref<4x128xbf16, #tpu.memory_space<vmem>>, vector<4x128xbf16>
    %cst_11 = arith.constant dense<0.000000e+00> : vector<64x128xf32>
    %11 = tpu.matmul %9, %10, %cst_11 {dimension_numbers = #tpu.dot_dimension_numbers<[1], [0], [0], [1], [0, 0, 1, 1], [], []>} : vector<64x4xbf16>, vector<4x128xbf16>, vector<64x128xf32> -> vector<64x128xf32>
    %c0_12 = arith.constant 0 : index
    %c0_13 = arith.constant 0 : index
    %12 = vector.load %arg6[%c0_12, %c0_13] : memref<64x128xf32, #tpu.memory_space<vmem>>, vector<64x128xf32>
    tpu.vector_store %arg6[%c0_12, %c0_13], %11 {strides = array<i32>} : memref<64x128xf32, #tpu.memory_space<vmem>>, vector<64x128xf32>,
    %cst_14 = arith.constant dense<0.000000e+00> : vector<128xf32>
    %13 = vector.multi_reduction <add>, %11, %cst_14 [0] : vector<64x128xf32> to vector<128xf32>
    %14 = vector.shape_cast %13 : vector<128xf32> to vector<1x128xf32>
    %15 = arith.mulf %11, %11 : vector<64x128xf32>
    %cst_15 = arith.constant dense<0.000000e+00> : vector<128xf32>
    %16 = vector.multi_reduction <add>, %15, %cst_15 [0] : vector<64x128xf32> to vector<128xf32>
    %17 = vector.shape_cast %16 : vector<128xf32> to vector<1x128xf32>
    %18 = tpu.concatenate %5, %8, %14, %17 in 0 : vector<1x128xf32>, vector<1x128xf32>, vector<1x128xf32>, vector<1x128xf32> -> vector<4x128xf32>
    %19 = vector.shape_cast %18 : vector<4x128xf32> to vector<1x4x128xf32>
    %c0_16 = arith.constant 0 : index
    %c0_17 = arith.constant 0 : index
    %c0_18 = arith.constant 0 : index
    %20 = vector.load %arg7[%c0_16, %c0_17, %c0_18] : memref<1x4x128xf32, #tpu.memory_space<vmem>>, vector<1x4x128xf32>
    tpu.vector_store %arg7[%c0_16, %c0_17, %c0_18], %19 {strides = array<i32>} : memref<1x4x128xf32, #tpu.memory_space<vmem>>, vector<1x4x128xf32>,
    return
  }
  func.func @transform_0(%arg0: i32) -> (i32, i32) {
    %c0_i32 = arith.constant 0 : i32
    %c0_i32_0 = arith.constant 0 : i32
    return %arg0, %c0_i32 : i32, i32
  }
  func.func @transform_1(%arg0: i32) -> (i32, i32) {
    %c0_i32 = arith.constant 0 : i32
    %c0_i32_0 = arith.constant 0 : i32
    %c0_i32_1 = arith.constant 0 : i32
    return %c0_i32, %c0_i32_0 : i32, i32
  }
  func.func @transform_2(%arg0: i32) -> (i32, i32) {
    %c0_i32 = arith.constant 0 : i32
    %c0_i32_0 = arith.constant 0 : i32
    return %arg0, %c0_i32 : i32, i32
  }
  func.func @transform_3(%arg0: i32) -> (i32, i32) {
    %c0_i32 = arith.constant 0 : i32
    %c0_i32_0 = arith.constant 0 : i32
    %c0_i32_1 = arith.constant 0 : i32
    return %c0_i32, %c0_i32_0 : i32, i32
  }
  func.func @transform_4(%arg0: i32) -> (i32, i32) {
    %c0_i32 = arith.constant 0 : i32
    %c0_i32_0 = arith.constant 0 : i32
    return %arg0, %c0_i32 : i32, i32
  }
  func.func @transform_5(%arg0: i32) -> (i32, i32) {
    %c0_i32 = arith.constant 0 : i32
    %c0_i32_0 = arith.constant 0 : i32
    return %arg0, %c0_i32 : i32, i32
  }
  func.func @transform_6(%arg0: i32) -> (i32, i32, i32) {
    %c0_i32 = arith.constant 0 : i32
    %c0_i32_0 = arith.constant 0 : i32
    %c0_i32_1 = arith.constant 0 : i32
    return %arg0, %c0_i32, %c0_i32_0 : i32, i32, i32
  }
}

module attributes {stable_mosaic.version = 11 : i64} {
  func.func @_bn_add_relu_kernel(%arg0: i32, %arg1: memref<64x128xf32, #tpu.memory_space<vmem>>, %arg2: memref<1x128xf32, #tpu.memory_space<vmem>>, %arg3: memref<1x128xf32, #tpu.memory_space<vmem>>, %arg4: memref<64x128xf32, #tpu.memory_space<vmem>>, %arg5: memref<1x128xf32, #tpu.memory_space<vmem>>, %arg6: memref<1x128xf32, #tpu.memory_space<vmem>>, %arg7: memref<64x128xf32, #tpu.memory_space<vmem>>) attributes {dimension_semantics = [#tpu.dimension_semantics<parallel>], iteration_bounds = array<i64: 2>, scalar_prefetch = 0 : i64, scratch_operands = 0 : i64, tpu.core_type = #tpu.core_type<tc>, window_params = [{transform_indices = @transform_0, window_bounds = array<i64: 64, 128>}, {pipeline_mode = #tpu.pipeline_mode<synchronous>, transform_indices = @transform_1, window_bounds = array<i64: 1, 128>}, {pipeline_mode = #tpu.pipeline_mode<synchronous>, transform_indices = @transform_2, window_bounds = array<i64: 1, 128>}, {transform_indices = @transform_3, window_bounds = array<i64: 64, 128>}, {pipeline_mode = #tpu.pipeline_mode<synchronous>, transform_indices = @transform_4, window_bounds = array<i64: 1, 128>}, {pipeline_mode = #tpu.pipeline_mode<synchronous>, transform_indices = @transform_5, window_bounds = array<i64: 1, 128>}, {transform_indices = @transform_6, window_bounds = array<i64: 64, 128>}]} {
    %c0 = arith.constant 0 : index
    %c0_0 = arith.constant 0 : index
    %0 = vector.load %arg1[%c0, %c0_0] : memref<64x128xf32, #tpu.memory_space<vmem>>, vector<64x128xf32>
    %c0_1 = arith.constant 0 : index
    %c0_2 = arith.constant 0 : index
    %1 = vector.load %arg2[%c0_1, %c0_2] : memref<1x128xf32, #tpu.memory_space<vmem>>, vector<1x128xf32>
    %c0_3 = arith.constant 0 : index
    %c0_4 = arith.constant 0 : index
    %2 = vector.load %arg3[%c0_3, %c0_4] : memref<1x128xf32, #tpu.memory_space<vmem>>, vector<1x128xf32>
    %3 = vector.broadcast %1 : vector<1x128xf32> to vector<64x128xf32>
    %4 = arith.mulf %0, %3 : vector<64x128xf32>
    %5 = vector.broadcast %2 : vector<1x128xf32> to vector<64x128xf32>
    %6 = arith.addf %4, %5 : vector<64x128xf32>
    %c0_5 = arith.constant 0 : index
    %c0_6 = arith.constant 0 : index
    %7 = vector.load %arg4[%c0_5, %c0_6] : memref<64x128xf32, #tpu.memory_space<vmem>>, vector<64x128xf32>
    %c0_7 = arith.constant 0 : index
    %c0_8 = arith.constant 0 : index
    %8 = vector.load %arg5[%c0_7, %c0_8] : memref<1x128xf32, #tpu.memory_space<vmem>>, vector<1x128xf32>
    %c0_9 = arith.constant 0 : index
    %c0_10 = arith.constant 0 : index
    %9 = vector.load %arg6[%c0_9, %c0_10] : memref<1x128xf32, #tpu.memory_space<vmem>>, vector<1x128xf32>
    %10 = vector.broadcast %8 : vector<1x128xf32> to vector<64x128xf32>
    %11 = arith.mulf %7, %10 : vector<64x128xf32>
    %12 = vector.broadcast %9 : vector<1x128xf32> to vector<64x128xf32>
    %13 = arith.addf %11, %12 : vector<64x128xf32>
    %14 = arith.addf %6, %13 : vector<64x128xf32>
    %cst = arith.constant 0.000000e+00 : f32
    %15 = vector.broadcast %cst : f32 to vector<64x128xf32>
    %16 = arith.maximumf %14, %15 : vector<64x128xf32>
    %c0_11 = arith.constant 0 : index
    %c0_12 = arith.constant 0 : index
    %17 = vector.load %arg7[%c0_11, %c0_12] : memref<64x128xf32, #tpu.memory_space<vmem>>, vector<64x128xf32>
    tpu.vector_store %arg7[%c0_11, %c0_12], %16 {strides = array<i32>} : memref<64x128xf32, #tpu.memory_space<vmem>>, vector<64x128xf32>,
    return
  }
  func.func @transform_0(%arg0: i32) -> (i32, i32) {
    %c0_i32 = arith.constant 0 : i32
    %c0_i32_0 = arith.constant 0 : i32
    return %arg0, %c0_i32 : i32, i32
  }
  func.func @transform_1(%arg0: i32) -> (i32, i32) {
    %c0_i32 = arith.constant 0 : i32
    %c0_i32_0 = arith.constant 0 : i32
    %c0_i32_1 = arith.constant 0 : i32
    return %c0_i32, %c0_i32_0 : i32, i32
  }
  func.func @transform_2(%arg0: i32) -> (i32, i32) {
    %c0_i32 = arith.constant 0 : i32
    %c0_i32_0 = arith.constant 0 : i32
    %c0_i32_1 = arith.constant 0 : i32
    return %c0_i32, %c0_i32_0 : i32, i32
  }
  func.func @transform_3(%arg0: i32) -> (i32, i32) {
    %c0_i32 = arith.constant 0 : i32
    %c0_i32_0 = arith.constant 0 : i32
    return %arg0, %c0_i32 : i32, i32
  }
  func.func @transform_4(%arg0: i32) -> (i32, i32) {
    %c0_i32 = arith.constant 0 : i32
    %c0_i32_0 = arith.constant 0 : i32
    %c0_i32_1 = arith.constant 0 : i32
    return %c0_i32, %c0_i32_0 : i32, i32
  }
  func.func @transform_5(%arg0: i32) -> (i32, i32) {
    %c0_i32 = arith.constant 0 : i32
    %c0_i32_0 = arith.constant 0 : i32
    %c0_i32_1 = arith.constant 0 : i32
    return %c0_i32, %c0_i32_0 : i32, i32
  }
  func.func @transform_6(%arg0: i32) -> (i32, i32) {
    %c0_i32 = arith.constant 0 : i32
    %c0_i32_0 = arith.constant 0 : i32
    return %arg0, %c0_i32 : i32, i32
  }
}

</mosaic_0001>

<bundles_post_ra>
// kernel: basic_block_forward.5
= control target key start
LH: loop header
LB: loop body
LE: loop exit
PB: predicated region body
PF: predicated region fallthrough
CT: control target
= control target key end

     0   :  { %s404_s12 = smov 0   ;;  %s431_s0 = inlined_call_operand.vmem [shape: f32[128,128], index: 0, kind: input, shape index: {}]   ;;  %s432_s1 = inlined_call_operand.vmem [shape: f32[1,128], index: 1, kind: input, shape index: {}]   ;;  %s433_s2 = inlined_call_operand.vmem [shape: f32[1,128], index: 2, kind: input, shape index: {}]   ;;  %s434_s3 = inlined_call_operand.vmem [shape: bf16[128,128], index: 3, kind: output, shape index: {}]  }
   0x1 LB: > { %s316_s13 = sadd.s32 4294967295, %s382_s12   ;;  %p320_p0 = scmp.ge.s32.totalorder %s382_s12, 1  ;;  %s382_s12 = sphi %s404_s12, %s13_s12  }
   0x2   : > { %p138_p1 = scmp.lt.s32.totalorder %s382_s12, 3 }
   0x4   : > { %p139_p2 = pnand %p320_p0, %p138_p1 }
   0x5   : > { %s321_s14 = sshll.u32 (!%p139_p2), %s316_s13, 3  ;;  %v325_v0 = vld [vmem:[%s432_s1] ss:$0 sm:$0xff] (!%p139_p2) }
   0x6   : > { %142 = sbr.rel (%p139_p2) target bundleno = 29 (0x1d), region = 32  ;;  %p163_p3 = scmp.lt.s32.totalorder (!%p139_p2), %s321_s14, 15  ;;  %v326_v1 = vld [vmem:[%s433_s2] ss:$0 sm:$0xff] (!%p139_p2) }
   0xd   : > { %s436_s14 = smov (!%p163_p3, %s321_s14), 15 }
   0xe   : > { %s322_s15 = sshll.u32 %s436_s14, 3  ;;  %s324_s23 = sshll.u32 %s436_s14, 2 }
   0xf   : > { %s166_s20 = scalar_lea.vmem %s431_s0, %s322_s15  ;;  %s172_s26 = scalar_lea.vmem %s434_s3, %s324_s23 }
  0x10   : > { %v174_v2 = vld [vmem:[%s166_s20] sm:$0xff]  ;;  %v175_v3 = vld [vmem:[%s166_s20 + $0x8] sm:$0xff]  ;;  %v176_v4 = vld [vmem:[%s166_s20 + $0x10] sm:$0xff] }
  0x11   : > { %v190_v5 = vmul.f32 %v325_v0, %v174_v2  ;;  %v191_v6 = vmul.f32 %v325_v0, %v175_v3  ;;  %v177_v7 = vld [vmem:[%s166_s20 + $0x18] sm:$0xff]  ;;  %v192_v8 = vmul.f32 %v325_v0, %v176_v4  ;;  %v178_v9 = vld [vmem:[%s166_s20 + $0x20] sm:$0xff]  ;;  %v179_v10 = vld [vmem:[%s166_s20 + $0x28] sm:$0xff] }
  0x12   : > { %v193_v11 = vmul.f32 %v325_v0, %v177_v7  ;;  %v194_v12 = vmul.f32 %v325_v0, %v178_v9  ;;  %v195_v13 = vmul.f32 %v325_v0, %v179_v10  ;;  %v180_v14 = vld [vmem:[%s166_s20 + $0x30] sm:$0xff]  ;;  %v181_v15 = vld [vmem:[%s166_s20 + $0x38] sm:$0xff] }
  0x13   : > { %v204_v16 = vadd.f32 %v326_v1, %v190_v5  ;;  %v205_v17 = vadd.f32 %v326_v1, %v191_v6  ;;  %v206_v18 = vadd.f32 %v326_v1, %v192_v8  ;;  %v196_v19 = vmul.f32 %v325_v0, %v180_v14 }
  0x14   : > { %v207_v20 = vadd.f32 %v326_v1, %v193_v11  ;;  %v208_v21 = vadd.f32 %v326_v1, %v194_v12  ;;  %v209_v22 = vadd.f32 %v326_v1, %v195_v13  ;;  %v197_v23 = vmul.f32 %v325_v0, %v181_v15 }
  0x15   : > { %v212_v24 = vmax.f32 %v204_v16, 0.0  ;;  %v213_v25 = vmax.f32 %v205_v17, 0.0  ;;  %v214_v26 = vmax.f32 %v206_v18, 0.0  ;;  %v210_v27 = vadd.f32 %v326_v1, %v196_v19 }
  0x16   : > { %v215_v28 = vmax.f32 %v207_v20, 0.0  ;;  %v216_v29 = vmax.f32 %v208_v21, 0.0  ;;  %v217_v30 = vmax.f32 %v209_v22, 0.0  ;;  %v211_v31 = vadd.f32 %v326_v1, %v197_v23 }
  0x17   : > { %v348_v32 = vpack.c.bf16 %v213_v25, %v212_v24  ;;  %v218_v33 = vmax.f32 %v210_v27, 0.0 }
  0x18   : > { %v353_v34 = vpack.c.bf16 %v215_v28, %v214_v26  ;;  %v358_v35 = vpack.c.bf16 %v217_v30, %v216_v29  ;;  %v219_v36 = vmax.f32 %v211_v31, 0.0 }
  0x19   : > { %349 = vst [vmem:[%s172_s26] sm:$0xff] %v348_v32  }
  0x1a   : > { %365 = vst [vmem:[%s172_s26 + $0x8] sm:$0xff] %v353_v34   ;;  %366 = vst [vmem:[%s172_s26 + $0x10] sm:$0xff] %v358_v35   ;;  %v363_v37 = vpack.c.bf16 %v219_v36, %v218_v33 }
  0x1c   : > { %367 = vst [vmem:[%s172_s26 + $0x18] sm:$0xff] %v363_v37  }
  0x1d PF: > { %s13_s12 = sadd.s32 1, %s382_s12  }
  0x1e   : > { %p10_p4 = scmp.ge.s32.totalorder %s13_s12, 4  }
  0x20   :  { %12 = sbr.rel (!%p10_p4) target bundleno = 1 (0x1), region = 62 }

// kernel: basic_block_forward.4
= control target key start
LH: loop header
LB: loop body
LE: loop exit
PB: predicated region body
PF: predicated region fallthrough
CT: control target
= control target key end

     0   :  { %s543_s12 = smov 0   ;;  %s577_s0 = inlined_call_operand.vmem [shape: bf16[128,36], index: 0, kind: input, shape index: {}]   ;;  %s578_s1 = inlined_call_operand.vmem [shape: bf16[36,128], index: 1, kind: input, shape index: {}]   ;;  %s579_s2 = inlined_call_operand.vmem [shape: f32[128,128], index: 2, kind: output, shape index: {0}]   ;;  %s580_s3 = inlined_call_operand.vmem [shape: f32[2,2,128], index: 3, kind: output, shape index: {1}]  }
   0x1 LB: > { %s549_s13 = sadd.s32 4294967295, %s521_s12   ;;  %p452_p0 = scmp.ge.s32.totalorder %s521_s12, 1  ;;  %s521_s12 = sphi %s543_s12, %s14_s12  }
   0x2   : > { %p141_p1 = scmp.lt.s32.totalorder %s521_s12, 3 }
   0x4   : > { %p142_p2 = pnand %p452_p0, %p141_p1 }
   0x5   : > { %v508_v0 = vld [vmem:[%s578_s1] sm:$0xff] (!%p142_p2)   ;;  %v509_v1 = vld [vmem:[%s578_s1 + $0x8] sm:$0xff] (!%p142_p2)   ;;  %s453_s18 = sshll.u32 (!%p142_p2), %s549_s13, 3  ;;  %v510_v2 = vld [vmem:[%s578_s1 + $0x10] ss:$0 sps:$4 sm:$0x33] (!%p142_p2)  }
   0x6   : > { %145 = sbr.rel (%p142_p2) target bundleno = 263 (0x107), region = 28  ;;  %478 = vmatprep.subr.bf16.mxu0 (!%p142_p2), %v508_v0  ;;  %492 = vmatprep.subr.bf16.mxu1 (!%p142_p2), %v508_v0  ;;  %p170_p3 = scmp.lt.s32.totalorder (!%p142_p2), %s453_s18, 15  ;;  %vm247_vm0 = vcmask (!%p142_p2), 1041408   ;;  %vm234_vm1 = vcmask (!%p142_p2), 293888   ;;  %vm358_vm2 = vcmask (!%p142_p2), 1040384  }
   0x7   : > { %479 = vmatpush3.bf16.msra.mxu0 (!%p142_p2), %v508_v0  ;;  %495 = vmatpush3.bf16.msra.mxu1 (!%p142_p2), %v508_v0  ;;  %v249_v3 = vsel (!%p142_p2), %vm247_vm0, %v510_v2, 0  ;;  %p181_p4 = scmp.lt.s32.totalorder (!%p142_p2), %s549_s13, 1 }
   0x8   : > { %480 = vmatprep.subr.bf16.mxu0 (!%p142_p2), %v509_v1  ;;  %493 = vmatprep.subr.bf16.mxu1 (!%p142_p2), %v509_v1 }
   0xb   : > { %481 = vmatpush3.bf16.msra.mxu0 (!%p142_p2), %v509_v1  ;;  %496 = vmatpush3.bf16.msra.mxu1 (!%p142_p2), %v509_v1 }
   0xc   : > { %498 = vmatprep.subr.msk.bf16.mxu0 (!%p142_p2), %vm247_vm0, %v510_v2  ;;  %499 = vmatprep.subr.msk.bf16.mxu1 (!%p142_p2), %vm247_vm0, %v510_v2 }
   0xd   : > { %s582_s18 = smov (!%p170_p3, %s453_s18), 15  ;;  %s584_s13 = smov (!%p181_p4, %s549_s13), 1 }
   0xe   : > { %s454_s21 = sshll.u32 %s582_s18, 2  ;;  %s456_s25 = sshll.u32 %s582_s18, 3 }
   0xf   : > { %s173_s24 = scalar_lea.vmem %s577_s0, %s454_s21  ;;  %483 = vmatpush3.bf16.msra.mxu0 %v249_v3  ;;  %497 = vmatpush3.bf16.msra.mxu1 %v249_v3  ;;  %s179_s28 = scalar_lea.vmem %s579_s2, %s456_s25 }
  0x10   : > { %v511_v4 = vld [vmem:[%s173_s24] sm:$0xff]   ;;  %v512_v5 = vld [vmem:[%s173_s24 + $0x8] sm:$0xff]   ;;  %v513_v6 = vld [vmem:[%s173_s24 + $0x10] sm:$0xff]   ;;  %s457_s29 = sshll.u32 %s584_s13, 1 }
  0x11   : > { %484 = vmatprep.mubr.msk.bf16.mxu0 %vm234_vm1, %v511_v4  ;;  %v514_v7 = vld [vmem:[%s173_s24 + $0x18] sm:$0xff]   ;;  %488 = vmatprep.mubr.msk.bf16.mxu1 %vm234_vm1, %v513_v6  ;;  %s184_s5 = scalar_lea.vmem %s580_s3, %s457_s29 }
  0x12   : > { %485 = vmatmul.mubr.msk.bf16.vlgmr.msra.gmra.mrb[0].mxu0 %vm234_vm1, %v512_v5  ;;  %489 = vmatmul.mubr.msk.bf16.vlgmr.msra.gmra.mrb[0].mxu1 %vm234_vm1, %v514_v7 }
  0xe5   : > { %v486_v8 = vpop.f32.mrb[0].mxu0  ;;  %v490_v9 = vpop.f32.mrb[0].mxu1 }
  0xe6   : > { %318 = vst [vmem:[%s179_s28 + $0x10] sm:$0xff] %v486_v8  ;;  %v285_v10 = vpop.f32.mrb[1].mxu0  ;;  %322 = vst [vmem:[%s179_s28 + $0x30] sm:$0xff] %v490_v9  ;;  %v301_v11 = vpop.f32.mrb[1].mxu1  ;;  %v339_v19 = vmul.f32 %v486_v8, %v486_v8  ;;  %v343_v31 = vmul.f32 %v490_v9, %v490_v9 }
  0xe7   : > { %316 = vst [vmem:[%s179_s28] sm:$0xff] %v285_v10  ;;  %v487_v12 = vpop.f32.mrb[2].mxu0  ;;  %320 = vst [vmem:[%s179_s28 + $0x20] sm:$0xff] %v301_v11  ;;  %v491_v13 = vpop.f32.mrb[2].mxu1  ;;  %v337_v16 = vmul.f32 %v285_v10, %v285_v10  ;;  %v341_v25 = vmul.f32 %v301_v11, %v301_v11 }
  0xe8   : > { %319 = vst [vmem:[%s179_s28 + $0x18] sm:$0xff] %v487_v12  ;;  %v288_v14 = vpop.f32.mrb[3].mxu0  ;;  %323 = vst [vmem:[%s179_s28 + $0x38] sm:$0xff] %v491_v13  ;;  %v304_v15 = vpop.f32.mrb[3].mxu1  ;;  %v340_v22 = vmul.f32 %v487_v12, %v487_v12  ;;  %v344_v34 = vmul.f32 %v491_v13, %v491_v13 }
  0xe9   : > { %317 = vst [vmem:[%s179_s28 + $0x8] sm:$0xff] %v288_v14  ;;  %v324_v17 = vadd.f32 %v288_v14, %v285_v10  ;;  %v338_v18 = vmul.f32 %v288_v14, %v288_v14  ;;  %321 = vst [vmem:[%s179_s28 + $0x28] sm:$0xff] %v304_v15  ;;  %v342_v30 = vmul.f32 %v304_v15, %v304_v15 }
  0xeb   : > { %v325_v20 = vadd.f32 %v486_v8, %v324_v17  ;;  %v345_v21 = vadd.f32 %v338_v18, %v337_v16 }
  0xed   : > { %v346_v23 = vadd.f32 %v345_v21, %v339_v19  ;;  %v326_v24 = vadd.f32 %v487_v12, %v325_v20 }
  0xef   : > { %v327_v26 = vadd.f32 %v326_v24, %v301_v11  ;;  %v347_v27 = vadd.f32 %v346_v23, %v340_v22 }
  0xf1   : > { %v348_v28 = vadd.f32 %v347_v27, %v341_v25  ;;  %v328_v29 = vadd.f32 %v327_v26, %v304_v15 }
  0xf3   : > { %v329_v32 = vadd.f32 %v490_v9, %v328_v29  ;;  %v349_v33 = vadd.f32 %v348_v28, %v342_v30 }
  0xf5   : > { %v330_v35 = vadd.f32 %v491_v13, %v329_v32  ;;  %v350_v36 = vadd.f32 %v349_v33, %v343_v31 }
  0xf7   : > { %v331_v37 = vrot.slane %v330_v35, 4  ;;  %v351_v38 = vadd.f32 %v350_v36, %v344_v34 }
  0xf9   : > { %v332_v39 = vadd.f32 %v331_v37, %v330_v35  ;;  %v352_v40 = vrot.slane %v351_v38, 4 }
  0xfb   : > { %v333_v41 = vrot.slane %v332_v39, 2  ;;  %v353_v42 = vadd.f32 %v352_v40, %v351_v38 }
  0xfd   : > { %v334_v43 = vadd.f32 %v333_v41, %v332_v39  ;;  %v354_v44 = vrot.slane %v353_v42, 2 }
  0xff   : > { %v335_v45 = vrot.slane %v334_v43, 1  ;;  %v355_v46 = vadd.f32 %v354_v44, %v353_v42 }
 0x101   : > { %v356_v47 = vrot.slane %v355_v46, 1  ;;  %v336_v48 = vadd.f32 %v335_v45, %v334_v43 }
 0x103   : > { %v357_v49 = vadd.f32 %v356_v47, %v355_v46 }
 0x105   : > { %v359_v50 = vsel %vm358_vm2, %v336_v48, %v357_v49 }
 0x106   : > { %360 = vst [vmem:[%s184_s5] sm:$0x3] %v359_v50 }
 0x107 PF: > { %s14_s12 = sadd.s32 1, %s521_s12  }
 0x108   : > { %p11_p5 = scmp.ge.s32.totalorder %s14_s12, 4  }
 0x10a   :  { %13 = sbr.rel (!%p11_p5) target bundleno = 1 (0x1), region = 70 }

// kernel: basic_block_forward.7
= control target key start
LH: loop header
LB: loop body
LE: loop exit
PB: predicated region body
PF: predicated region fallthrough
CT: control target
= control target key end

     0   :  { %s513_s21 = smov 0   ;;  %s600_s0 = inlined_call_operand.vmem [shape: f32[128,128], index: 0, kind: input, shape index: {}]   ;;  %s601_s1 = inlined_call_operand.vmem [shape: f32[1,128], index: 1, kind: input, shape index: {}]   ;;  %s602_s2 = inlined_call_operand.vmem [shape: f32[1,128], index: 2, kind: input, shape index: {}]   ;;  %s603_s3 = inlined_call_operand.vmem [shape: f32[128,128], index: 3, kind: input, shape index: {}]   ;;  %s604_s4 = inlined_call_operand.vmem [shape: f32[1,128], index: 4, kind: input, shape index: {}]   ;;  %s605_s5 = inlined_call_operand.vmem [shape: f32[1,128], index: 5, kind: input, shape index: {}]   ;;  %s606_s6 = inlined_call_operand.vmem [shape: f32[128,128], index: 6, kind: output, shape index: {}]  }
   0x1 LB: > { %s445_s22 = sadd.s32 4294967295, %s476_s21   ;;  %p449_p0 = scmp.ge.s32.totalorder %s476_s21, 1  ;;  %s476_s21 = sphi %s513_s21, %s16_s21  }
   0x2   : > { %p224_p1 = scmp.lt.s32.totalorder %s476_s21, 3 }
   0x4   : > { %p225_p2 = pnand %p449_p0, %p224_p1 }
   0x5   : > { %s450_s23 = sshll.u32 (!%p225_p2), %s445_s22, 3  ;;  %v456_v0 = vld [vmem:[%s601_s1] ss:$0 sm:$0xff] (!%p225_p2) }
   0x6   : > { %228 = sbr.rel (%p225_p2) target bundleno = 35 (0x23), region = 44  ;;  %p260_p3 = scmp.lt.s32.totalorder (!%p225_p2), %s450_s23, 15  ;;  %v458_v1 = vld [vmem:[%s604_s4] ss:$0 sm:$0xff] (!%p225_p2) }
   0x7   : > { %v544_v2 = vld [vmem:[%s602_s2] ss:$0 sm:$0xff] (!%p225_p2) }
   0x8   : > { %v549_v3 = vld [vmem:[%s605_s5] ss:$0 sm:$0xff] (!%p225_p2) }
   0xd   : > { %s608_s23 = smov (!%p260_p3, %s450_s23), 15 }
   0xe   : > { %s521_s24 = sshll.u32 %s608_s23, 3 }
   0xf   : > { %s533_s7 = scalar_lea.vmem %s600_s0, %s521_s24  ;;  %s539_s10 = scalar_lea.vmem %s603_s3, %s521_s24 }
  0x10   : > { %v277_v4 = vld [vmem:[%s533_s7] sm:$0xff]  ;;  %v278_v6 = vld [vmem:[%s533_s7 + $0x8] sm:$0xff]  ;;  %v279_v11 = vld [vmem:[%s533_s7 + $0x10] sm:$0xff]  ;;  %s574_s17 = scalar_lea.vmem %s606_s6, %s521_s24 }
  0x11   : > { %v315_v5 = vld [vmem:[%s539_s10] sm:$0xff]  ;;  %v293_v7 = vmul.f32 %v456_v0, %v277_v4  ;;  %v294_v9 = vmul.f32 %v456_v0, %v278_v6  ;;  %v316_v10 = vld [vmem:[%s539_s10 + $0x8] sm:$0xff]  ;;  %v317_v12 = vld [vmem:[%s539_s10 + $0x10] sm:$0xff]  ;;  %v295_v14 = vmul.f32 %v456_v0, %v279_v11 }
  0x12   : > { %v331_v8 = vmul.f32 %v458_v1, %v315_v5  ;;  %v332_v13 = vmul.f32 %v458_v1, %v316_v10  ;;  %v333_v15 = vmul.f32 %v458_v1, %v317_v12  ;;  %v280_v16 = vld [vmem:[%s533_s7 + $0x18] sm:$0xff]  ;;  %v281_v18 = vld [vmem:[%s533_s7 + $0x20] sm:$0xff]  ;;  %v282_v24 = vld [vmem:[%s533_s7 + $0x28] sm:$0xff] }
  0x13   : > { %v318_v17 = vld [vmem:[%s539_s10 + $0x18] sm:$0xff]  ;;  %v307_v19 = vadd.f32 %v544_v2, %v293_v7  ;;  %v308_v21 = vadd.f32 %v544_v2, %v294_v9  ;;  %v296_v22 = vmul.f32 %v456_v0, %v280_v16  ;;  %v319_v23 = vld [vmem:[%s539_s10 + $0x20] sm:$0xff]  ;;  %v309_v26 = vadd.f32 %v544_v2, %v295_v14  ;;  %v320_v29 = vld [vmem:[%s539_s10 + $0x28] sm:$0xff] }
  0x14   : > { %v345_v20 = vadd.f32 %v549_v3, %v331_v8  ;;  %v346_v25 = vadd.f32 %v549_v3, %v332_v13  ;;  %v347_v27 = vadd.f32 %v549_v3, %v333_v15  ;;  %v334_v28 = vmul.f32 %v458_v1, %v318_v17  ;;  %v283_v38 = vld [vmem:[%s533_s7 + $0x30] sm:$0xff]  ;;  %v284_v44 = vld [vmem:[%s533_s7 + $0x38] sm:$0xff] }
  0x15   : > { %v310_v31 = vadd.f32 %v544_v2, %v296_v22  ;;  %v297_v32 = vmul.f32 %v456_v0, %v281_v18  ;;  %v335_v33 = vmul.f32 %v458_v1, %v319_v23  ;;  %v298_v37 = vmul.f32 %v456_v0, %v282_v24  ;;  %v321_v39 = vld [vmem:[%s539_s10 + $0x30] sm:$0xff]  ;;  %v322_v45 = vld [vmem:[%s539_s10 + $0x38] sm:$0xff] }
  0x16   : > { %v353_v30 = vadd.f32 %v345_v20, %v307_v19  ;;  %v354_v34 = vadd.f32 %v346_v25, %v308_v21  ;;  %v355_v35 = vadd.f32 %v347_v27, %v309_v26  ;;  %v348_v36 = vadd.f32 %v549_v3, %v334_v28 }
  0x17   : > { %v311_v41 = vadd.f32 %v544_v2, %v297_v32  ;;  %v349_v42 = vadd.f32 %v549_v3, %v335_v33  ;;  %v336_v43 = vmul.f32 %v458_v1, %v320_v29  ;;  %v312_v49 = vadd.f32 %v544_v2, %v298_v37 }
  0x18   : > { %v361_v40 = vmax.f32 %v353_v30, 0.0  ;;  %v362_v46 = vmax.f32 %v354_v34, 0.0  ;;  %v363_v47 = vmax.f32 %v355_v35, 0.0  ;;  %v356_v48 = vadd.f32 %v348_v36, %v310_v31 }
  0x19   : > { %v357_v50 = vadd.f32 %v349_v42, %v311_v41  ;;  %v350_v51 = vadd.f32 %v549_v3, %v336_v43  ;;  %v299_v52 = vmul.f32 %v456_v0, %v283_v38  ;;  %v337_v53 = vmul.f32 %v458_v1, %v321_v39 }
  0x1a   : > { %369 = vst [vmem:[%s574_s17] sm:$0xff] %v361_v40  ;;  %370 = vst [vmem:[%s574_s17 + $0x8] sm:$0xff] %v362_v46  ;;  %v364_v54 = vmax.f32 %v356_v48, 0.0  ;;  %v300_v55 = vmul.f32 %v456_v0, %v284_v44  ;;  %v338_v56 = vmul.f32 %v458_v1, %v322_v45 }
  0x1b   : > { %371 = vst [vmem:[%s574_s17 + $0x10] sm:$0xff] %v363_v47  ;;  %v365_v57 = vmax.f32 %v357_v50, 0.0  ;;  %v358_v58 = vadd.f32 %v350_v51, %v312_v49  ;;  %v313_v59 = vadd.f32 %v544_v2, %v299_v52  ;;  %v351_v60 = vadd.f32 %v549_v3, %v337_v53 }
  0x1c   : > { %372 = vst [vmem:[%s574_s17 + $0x18] sm:$0xff] %v364_v54  ;;  %v314_v61 = vadd.f32 %v544_v2, %v300_v55  ;;  %v352_v62 = vadd.f32 %v549_v3, %v338_v56 }
  0x1d   : > { %373 = vst [vmem:[%s574_s17 + $0x20] sm:$0xff] %v365_v57  ;;  %v366_v63 = vmax.f32 %v358_v58, 0.0  ;;  %v359_v4 = vadd.f32 %v351_v60, %v313_v59 }
  0x1e   : > { %v360_v5 = vadd.f32 %v352_v62, %v314_v61 }
  0x1f   : > { %374 = vst [vmem:[%s574_s17 + $0x28] sm:$0xff] %v366_v63  ;;  %v367_v0 = vmax.f32 %v359_v4, 0.0 }
  0x20   : > { %v368_v6 = vmax.f32 %v360_v5, 0.0 }
  0x21   : > { %375 = vst [vmem:[%s574_s17 + $0x30] sm:$0xff] %v367_v0 }
  0x22   : > { %376 = vst [vmem:[%s574_s17 + $0x38] sm:$0xff] %v368_v6 }
  0x23 PF: > { %s16_s21 = sadd.s32 1, %s476_s21  }
  0x24   : > { %p13_p4 = scmp.ge.s32.totalorder %s16_s21, 4  }
  0x26   :  { %15 = sbr.rel (!%p13_p4) target bundleno = 1 (0x1), region = 77 }

// kernel: basic_block_forward.6
= control target key start
LH: loop header
LB: loop body
LE: loop exit
PB: predicated region body
PF: predicated region fallthrough
CT: control target
= control target key end

     0   :  { %s927_s21 = smov 0   ;;  %s1011_s0 = inlined_call_operand.vmem [shape: bf16[128,72], index: 0, kind: input, shape index: {}]   ;;  %s1012_s1 = inlined_call_operand.vmem [shape: bf16[72,128], index: 1, kind: input, shape index: {}]   ;;  %s1013_s2 = inlined_call_operand.vmem [shape: bf16[128,4], index: 2, kind: input, shape index: {}]   ;;  %s1014_s3 = inlined_call_operand.vmem [shape: bf16[4,128], index: 3, kind: input, shape index: {}]   ;;  %s1015_s4 = inlined_call_operand.vmem [shape: f32[128,128], index: 4, kind: output, shape index: {0}]   ;;  %s1016_s5 = inlined_call_operand.vmem [shape: f32[128,128], index: 5, kind: output, shape index: {1}]   ;;  %s1017_s6 = inlined_call_operand.vmem [shape: f32[2,4,128], index: 6, kind: output, shape index: {2}]  }
   0x1 LB: > { %s933_s22 = sadd.s32 4294967295, %s890_s21   ;;  %p786_p0 = scmp.ge.s32.totalorder %s890_s21, 1  ;;  %s890_s21 = sphi %s927_s21, %s17_s21  }
   0x2   : > { %p229_p1 = scmp.lt.s32.totalorder %s890_s21, 3 }
   0x4   : > { %p230_p2 = pnand %p786_p0, %p229_p1 }
   0x5   : > { %v871_v0 = vld [vmem:[%s1012_s1] sm:$0xff] (!%p230_p2)   ;;  %vm532_vm0 = vcmask (!%p230_p2), 1041408   ;;  %v872_v1 = vld [vmem:[%s1012_s1 + $0x8] sm:$0xff] (!%p230_p2)   ;;  %s787_s27 = sshll.u32 (!%p230_p2), %s933_s22, 3  ;;  %v873_v4 = vld [vmem:[%s1012_s1 + $0x10] sm:$0xff] (!%p230_p2)   ;;  %vm519_vm1 = vcmask (!%p230_p2), 31744  }
   0x6   : > { %233 = sbr.rel (%p230_p2) target bundleno = 274 (0x112), region = 36  ;;  %833 = vmatprep.subr.bf16.mxu0 (!%p230_p2), %v871_v0  ;;  %v498_v2 = vld [vmem:[%s1014_s3] sm:$0x3] (!%p230_p2)  ;;  %p274_p3 = scmp.lt.s32.totalorder (!%p230_p2), %s787_s27, 15  ;;  %v876_v5 = vld [vmem:[%s1012_s1 + $0x18] sm:$0xff] (!%p230_p2)   ;;  %vm366_vm2 = vcmask (!%p230_p2), 588800  }
   0x7   : > { %834 = vmatpush3.bf16.msra.mxu0 (!%p230_p2), %v871_v0  ;;  %862 = vmatprep.subr.msk.bf16.mxu1 (!%p230_p2), %vm532_vm0, %v498_v2  ;;  %v534_v3 = vsel (!%p230_p2), %vm532_vm0, %v498_v2, 0  ;;  %v877_v8 = vld [vmem:[%s1012_s1 + $0x20] ss:$0 sps:$4 sm:$0xff] (!%p230_p2)   ;;  %vm379_vm3 = vcmask (!%p230_p2), 1043456   ;;  %p297_p4 = scmp.lt.s32.totalorder (!%p230_p2), %s933_s22, 1  ;;  %vm643_vm4 = vcmask (!%p230_p2), 1040384  }
   0x8   : > { %835 = vmatprep.subr.bf16.mxu0 (!%p230_p2), %v872_v1  ;;  %852 = vmatpush3.bf16.msra.mxu1 (!%p230_p2), %v534_v3  ;;  %v381_v11 = vsel (!%p230_p2), %vm379_vm3, %v877_v8, 0  ;;  %vm646_vm5 = vcmask (!%p230_p2), 1042432  }
   0xb   : > { %836 = vmatpush3.bf16.msra.mxu0 (!%p230_p2), %v872_v1 }
   0xc   : > { %837 = vmatprep.subr.bf16.mxu0 (!%p230_p2), %v873_v4 }
   0xd   : > { %s1019_s27 = smov (!%p274_p3, %s787_s27), 15  ;;  %s1021_s22 = smov (!%p297_p4, %s933_s22), 1 }
   0xe   : > { %s788_s8 = sshll.u32 %s1019_s27, 2  ;;  %s792_s19 = sshll.u32 %s1019_s27, 3 }
   0xf   : > { %s283_s11 = scalar_lea.vmem %s1013_s2, %s788_s8  ;;  %s277_s18 = scalar_lea.vmem %s1011_s0, %s788_s8  ;;  %838 = vmatpush3.bf16.msra.mxu0 %v873_v4 }
  0x10   : > { %v874_v6 = vld [vmem:[%s283_s11] sm:$0xff]   ;;  %v875_v7 = vld [vmem:[%s283_s11 + $0x8] sm:$0xff]   ;;  %v878_v9 = vld [vmem:[%s283_s11 + $0x10] sm:$0xff]   ;;  %839 = vmatprep.subr.bf16.mxu0 %v876_v5  ;;  %s979_s24 = scalar_lea.vmem %s1016_s5, %s792_s19  ;;  %s988_s27 = scalar_lea.vmem %s1015_s4, %s792_s19 }
  0x11   : > { %853 = vmatprep.mubr.msk.bf16.mxu1 %vm519_vm1, %v874_v6  ;;  %v880_v10 = vld [vmem:[%s277_s18] sm:$0xff]   ;;  %v879_v12 = vld [vmem:[%s283_s11 + $0x18] sm:$0xff]   ;;  %v881_v13 = vld [vmem:[%s277_s18 + $0x8] sm:$0xff]   ;;  %s795_s28 = sshll.u32 %s1021_s22, 2 }
  0x12   : > { %854 = vmatmul.mubr.msk.bf16.vlgmr.msra.gmra.mrb[0].mxu1 %vm519_vm1, %v875_v7  ;;  %843 = vmatprep.mubr.msk.bf16.mxu0 %vm366_vm2, %v880_v10  ;;  %v882_v14 = vld [vmem:[%s277_s18 + $0x10] sm:$0xff]   ;;  %v883_v15 = vld [vmem:[%s277_s18 + $0x18] sm:$0xff]   ;;  %s300_s7 = scalar_lea.vmem %s1017_s6, %s795_s28 }
  0x13   : > { %857 = vmatprep.mubr.msk.bf16.mxu1 %vm519_vm1, %v878_v9  ;;  %840 = vmatpush3.bf16.msra.mxu0 %v876_v5 }
  0x14   : > { %861 = vmatprep.subr.msk.bf16.mxu0 %vm379_vm3, %v877_v8 }
  0x17   : > { %842 = vmatpush3.bf16.msra.mxu0 %v381_v11 }
  0x1a   : > { %858 = vmatmul.mubr.msk.bf16.gmra.mrb[4].mxu1 %vm519_vm1, %v879_v12  ;;  %844 = vmatmul.mubr.msk.bf16.vlgmr.msra.gmra.mrb[0].mxu0 %vm366_vm2, %v881_v13 }
  0x1b   : > { %847 = vmatprep.mubr.msk.bf16.mxu0 %vm366_vm2, %v882_v14 }
  0x22   : > { %848 = vmatmul.mubr.msk.bf16.gmra.mrb[4].mxu0 %vm366_vm2, %v883_v15 }
  0xe5   : > { %v855_v16 = vpop.f32.mrb[0].mxu1 }
  0xe6   : > { %603 = vst [vmem:[%s979_s24 + $0x10] sm:$0xff] %v855_v16  ;;  %v570_v17 = vpop.f32.mrb[1].mxu1  ;;  %v624_v21 = vmul.f32 %v855_v16, %v855_v16 }
  0xe7   : > { %601 = vst [vmem:[%s979_s24] sm:$0xff] %v570_v17  ;;  %v622_v18 = vmul.f32 %v570_v17, %v570_v17  ;;  %v856_v19 = vpop.f32.mrb[2].mxu1 }
  0xe8   : > { %604 = vst [vmem:[%s979_s24 + $0x18] sm:$0xff] %v856_v19  ;;  %v573_v20 = vpop.f32.mrb[3].mxu1  ;;  %v625_v24 = vmul.f32 %v856_v19, %v856_v19 }
  0xe9   : > { %602 = vst [vmem:[%s979_s24 + $0x8] sm:$0xff] %v573_v20  ;;  %v609_v22 = vadd.f32 %v573_v20, %v570_v17  ;;  %v623_v23 = vmul.f32 %v573_v20, %v573_v20 }
  0xeb   : > { %v610_v25 = vadd.f32 %v855_v16, %v609_v22  ;;  %v630_v26 = vadd.f32 %v623_v23, %v622_v18 }
  0xed   : > { %v631_v27 = vadd.f32 %v630_v26, %v624_v21  ;;  %v859_v28 = vpop.f32.mrb[4].mxu1  ;;  %v611_v29 = vadd.f32 %v856_v19, %v610_v25  ;;  %v845_v35 = vpop.f32.mrb[0].mxu0 }
  0xee   : > { %607 = vst [vmem:[%s979_s24 + $0x30] sm:$0xff] %v859_v28  ;;  %v586_v30 = vpop.f32.mrb[5].mxu1  ;;  %450 = vst [vmem:[%s988_s27 + $0x10] sm:$0xff] %v845_v35  ;;  %v417_v37 = vpop.f32.mrb[1].mxu0  ;;  %v628_v38 = vmul.f32 %v859_v28, %v859_v28  ;;  %v471_v50 = vmul.f32 %v845_v35, %v845_v35 }
  0xef   : > { %605 = vst [vmem:[%s979_s24 + $0x20] sm:$0xff] %v586_v30  ;;  %v612_v31 = vadd.f32 %v611_v29, %v586_v30  ;;  %v626_v32 = vmul.f32 %v586_v30, %v586_v30  ;;  %v632_v33 = vadd.f32 %v631_v27, %v625_v24  ;;  %v860_v34 = vpop.f32.mrb[6].mxu1  ;;  %448 = vst [vmem:[%s988_s27] sm:$0xff] %v417_v37  ;;  %v846_v42 = vpop.f32.mrb[2].mxu0 }
  0xf0   : > { %608 = vst [vmem:[%s979_s24 + $0x38] sm:$0xff] %v860_v34  ;;  %v589_v36 = vpop.f32.mrb[7].mxu1  ;;  %v629_v43 = vmul.f32 %v860_v34, %v860_v34  ;;  %v469_v44 = vmul.f32 %v417_v37, %v417_v37  ;;  %451 = vst [vmem:[%s988_s27 + $0x18] sm:$0xff] %v846_v42  ;;  %v420_v45 = vpop.f32.mrb[3].mxu0  ;;  %v472_v59 = vmul.f32 %v846_v42, %v846_v42 }
  0xf1   : > { %v633_v39 = vadd.f32 %v632_v33, %v626_v32  ;;  %606 = vst [vmem:[%s979_s24 + $0x28] sm:$0xff] %v589_v36  ;;  %v613_v40 = vadd.f32 %v612_v31, %v589_v36  ;;  %v627_v41 = vmul.f32 %v589_v36, %v589_v36  ;;  %449 = vst [vmem:[%s988_s27 + $0x8] sm:$0xff] %v420_v45 }
  0xf2   : > { %v456_v48 = vadd.f32 %v420_v45, %v417_v37  ;;  %v470_v49 = vmul.f32 %v420_v45, %v420_v45 }
  0xf3   : > { %v614_v46 = vadd.f32 %v859_v28, %v613_v40  ;;  %v634_v47 = vadd.f32 %v633_v39, %v627_v41 }
  0xf4   : > { %v457_v53 = vadd.f32 %v845_v35, %v456_v48  ;;  %v477_v54 = vadd.f32 %v470_v49, %v469_v44 }
  0xf5   : > { %v615_v51 = vadd.f32 %v860_v34, %v614_v46  ;;  %v635_v52 = vadd.f32 %v634_v47, %v628_v38  ;;  %v849_v57 = vpop.f32.mrb[4].mxu0 }
  0xf6   : > { %v478_v56 = vadd.f32 %v477_v54, %v471_v50  ;;  %v458_v58 = vadd.f32 %v846_v42, %v457_v53  ;;  %454 = vst [vmem:[%s988_s27 + $0x30] sm:$0xff] %v849_v57  ;;  %v433_v60 = vpop.f32.mrb[5].mxu0  ;;  %v475_v8 = vmul.f32 %v849_v57, %v849_v57 }
  0xf7   : > { %v636_v55 = vadd.f32 %v635_v52, %v629_v43  ;;  %452 = vst [vmem:[%s988_s27 + $0x20] sm:$0xff] %v433_v60  ;;  %v473_v62 = vmul.f32 %v433_v60, %v433_v60  ;;  %v850_v63 = vpop.f32.mrb[6].mxu0  ;;  %v616_v2 = vrot.slane %v615_v51, 4 }
  0xf8   : > { %v459_v61 = vadd.f32 %v458_v58, %v433_v60  ;;  %v479_v0 = vadd.f32 %v478_v56, %v472_v59  ;;  %455 = vst [vmem:[%s988_s27 + $0x38] sm:$0xff] %v850_v63  ;;  %v436_v1 = vpop.f32.mrb[7].mxu0  ;;  %v476_v13 = vmul.f32 %v850_v63, %v850_v63 }
  0xf9   : > { %453 = vst [vmem:[%s988_s27 + $0x28] sm:$0xff] %v436_v1  ;;  %v474_v4 = vmul.f32 %v436_v1, %v436_v1  ;;  %v637_v5 = vrot.slane %v636_v55, 4  ;;  %v617_v10 = vadd.f32 %v616_v2, %v615_v51 }
  0xfa   : > { %v460_v3 = vadd.f32 %v459_v61, %v436_v1  ;;  %v480_v6 = vadd.f32 %v479_v0, %v473_v62 }
  0xfb   : > { %v638_v12 = vadd.f32 %v637_v5, %v636_v55  ;;  %v618_v17 = vrot.slane %v617_v10, 2 }
  0xfc   : > { %v461_v7 = vadd.f32 %v849_v57, %v460_v3  ;;  %v481_v9 = vadd.f32 %v480_v6, %v474_v4 }
  0xfd   : > { %v639_v19 = vrot.slane %v638_v12, 2  ;;  %v619_v23 = vadd.f32 %v618_v17, %v617_v10 }
  0xfe   : > { %v462_v11 = vadd.f32 %v850_v63, %v461_v7  ;;  %v482_v14 = vadd.f32 %v481_v9, %v475_v8 }
  0xff   : > { %v640_v25 = vadd.f32 %v639_v19, %v638_v12  ;;  %v620_v29 = vrot.slane %v619_v23, 1 }
 0x100   : > { %v463_v15 = vrot.slane %v462_v11, 4  ;;  %v483_v16 = vadd.f32 %v482_v14, %v476_v13 }
 0x101   : > { %v641_v30 = vrot.slane %v640_v25, 1  ;;  %v621_v34 = vadd.f32 %v620_v29, %v619_v23 }
 0x102   : > { %v464_v18 = vadd.f32 %v463_v15, %v462_v11  ;;  %v484_v20 = vrot.slane %v483_v16, 4 }
 0x103   : > { %v642_v35 = vadd.f32 %v641_v30, %v640_v25 }
 0x104   : > { %v465_v21 = vrot.slane %v464_v18, 2  ;;  %v485_v22 = vadd.f32 %v484_v20, %v483_v16 }
 0x106   : > { %v466_v24 = vadd.f32 %v465_v21, %v464_v18  ;;  %v486_v26 = vrot.slane %v485_v22, 2 }
 0x108   : > { %v467_v27 = vrot.slane %v466_v24, 1  ;;  %v487_v28 = vadd.f32 %v486_v26, %v485_v22 }
 0x10a   : > { %v488_v31 = vrot.slane %v487_v28, 1  ;;  %v468_v32 = vadd.f32 %v467_v27, %v466_v24 }
 0x10c   : > { %v489_v33 = vadd.f32 %v488_v31, %v487_v28 }
 0x10e   : > { %v644_v36 = vsel %vm643_vm4, %v468_v32, %v489_v33 }
 0x10f   : > { %v645_v37 = vsel %vm532_vm0, %v644_v36, %v621_v34 }
 0x110   : > { %v647_v38 = vsel %vm646_vm5, %v645_v37, %v642_v35 }
 0x111   : > { %648 = vst [vmem:[%s300_s7] sm:$0xf] %v647_v38 }
 0x112 PF: > { %s17_s21 = sadd.s32 1, %s890_s21  }
 0x113   : > { %p14_p5 = scmp.ge.s32.totalorder %s17_s21, 4  }
 0x115   :  { %16 = sbr.rel (!%p14_p5) target bundleno = 1 (0x1), region = 93 }

</bundles_post_ra>
